<compile_context>
chip_gen: v7x
topology: tpu7x:2x2x1
jax: 0.10.0
libtpu: 0.0.40
codegen_flags: <defaults>
</compile_context>

<pallas_src>
import functools
import math

import jax
import jax.numpy as jnp
from jax.experimental import pallas as pl
from jax.experimental.pallas import tpu as pltpu

_LANE = 128


def _round_up(x, m):
    return ((x + m - 1) // m) * m


def _xavier_uniform(key, fan_in, fan_out, dtype=jnp.float32):
    # matches torch.nn.init.xavier_uniform_ (gain=1)
    limit = math.sqrt(6.0 / (fan_in + fan_out))
    return jax.random.uniform(key, (fan_in, fan_out), dtype=dtype,
                              minval=-limit, maxval=limit)


def _vgcn_kernel(xe_ref, a_ref, w_ref, out_ref, *, nfeat, nhid, nlatent, nclass):
    A = a_ref[...]                                   # (N, N)
    x = xe_ref[:, 0:nfeat]                           # (N, nfeat)
    eps = xe_ref[:, nfeat:nfeat + nlatent]           # (N, nlatent)

    # static row offsets into the packed weight slab (all multiples of 8 here)
    r1 = nfeat
    r2 = nfeat + nhid
    r3 = nfeat + nhid + nlatent
    w1 = w_ref[0:r1, 0:nhid]                         # (nfeat, nhid)
    wcat = w_ref[r1:r2, 0:2 * nlatent]               # (nhid, 2*nlatent) = [Wmu | Wlv]
    wc = w_ref[r2:r3, 0:nclass]                      # (nlatent, nclass)
    bc = w_ref[r3:r3 + 1, 0:nclass]                  # (1, nclass)

    # gc1: relu(A @ (x @ W1)) == relu((A @ x) @ W1); nfeat < nhid so the
    # N x N matmul runs on the narrower operand.
    ax = jnp.dot(A, x, preferred_element_type=jnp.float32)
    h = jnp.maximum(jnp.dot(ax, w1, preferred_element_type=jnp.float32), 0.0)

    # fused gc_mu / gc_logvar: A @ (h @ [Wmu | Wlv])  -> (N, 2*nlatent)
    s = jnp.dot(h, wcat, preferred_element_type=jnp.float32)
    ml = jnp.dot(A, s, preferred_element_type=jnp.float32)
    mu = ml[:, 0:nlatent]
    logvar = ml[:, nlatent:2 * nlatent]

    # reparameterize: z = mu + eps * exp(0.5 * logvar)
    z = mu + eps * jnp.exp(0.5 * logvar)

    # classifier: z @ Wc^T_packed + bc
    logits = jnp.dot(z, wc, preferred_element_type=jnp.float32) + bc

    # pack outputs into one lane-dense slab: [mu | logvar | logits | pad]
    out_ref[:, 0:2 * nlatent] = ml
    out_ref[:, 2 * nlatent:2 * nlatent + nclass] = logits
    pad_w = out_ref.shape[1] - (2 * nlatent + nclass)
    if pad_w > 0:
        out_ref[:, 2 * nlatent + nclass:] = jnp.zeros(
            (out_ref.shape[0], pad_w), jnp.float32)


def variational_gcn_forward(x, A_norm, params, eps):
    N, nfeat = x.shape
    nhid = params["w1"].shape[1]
    nlatent = params["wc_t"].shape[0]
    nclass = params["wc_t"].shape[1]

    # ---- consolidate inputs into lane-dense slabs (DMA count 8 -> 3) ----
    xe_lanes = _round_up(nfeat + nlatent, _LANE)
    xe = jnp.zeros((N, xe_lanes), jnp.float32)
    xe = xe.at[:, 0:nfeat].set(x.astype(jnp.float32))
    xe = xe.at[:, nfeat:nfeat + nlatent].set(eps.astype(jnp.float32))

    w_lanes = _round_up(max(nhid, 2 * nlatent, nclass), _LANE)
    w_rows = _round_up(nfeat + nhid + nlatent + 1, 8)
    w_slab = jnp.zeros((w_rows, w_lanes), jnp.float32)
    w_slab = w_slab.at[0:nfeat, 0:nhid].set(params["w1"])
    w_slab = w_slab.at[nfeat:nfeat + nhid, 0:2 * nlatent].set(
        jnp.concatenate([params["wmu"], params["wlv"]], axis=1))
    w_slab = w_slab.at[nfeat + nhid:nfeat + nhid + nlatent, 0:nclass].set(
        params["wc_t"])
    w_slab = w_slab.at[nfeat + nhid + nlatent, 0:nclass].set(params["bc"])

    out_lanes = _round_up(2 * nlatent + nclass, _LANE)

    vmem = pl.BlockSpec(memory_space=pltpu.MemorySpace.VMEM)
    kernel = functools.partial(_vgcn_kernel, nfeat=nfeat, nhid=nhid,
                               nlatent=nlatent, nclass=nclass)

    out = pl.pallas_call(
        kernel,
        out_shape=jax.ShapeDtypeStruct((N, out_lanes), jnp.float32),
        in_specs=[vmem, vmem, vmem],
        out_specs=vmem,
    )(xe, A_norm.astype(jnp.float32), w_slab)

    mu = out[:, 0:nlatent]
    logvar = out[:, nlatent:2 * nlatent]
    logits = out[:, 2 * nlatent:2 * nlatent + nclass]
    return logits, mu, logvar


def make_params(key, nfeat, nhid, nlatent, nclass):
    k1, k2, k3, k4, k5 = jax.random.split(key, 5)
    w1 = _xavier_uniform(k1, nfeat, nhid)
    wmu = _xavier_uniform(k2, nhid, nlatent)
    wlv = _xavier_uniform(k3, nhid, nlatent)
    # nn.Linear(nlatent, nclass): weight (nclass, nlatent), bias (nclass,)
    bound = 1.0 / math.sqrt(nlatent)
    wc = jax.random.uniform(k4, (nclass, nlatent), minval=-bound, maxval=bound)
    bc = jax.random.uniform(k5, (nclass,), minval=-bound, maxval=bound)
    return {
        "w1": w1.astype(jnp.float32),
        "wmu": wmu.astype(jnp.float32),
        "wlv": wlv.astype(jnp.float32),
        "wc_t": jnp.transpose(wc).astype(jnp.float32),   # (nlatent, nclass)
        "bc": bc.astype(jnp.float32),                    # (nclass,)
    }


if __name__ == "__main__":
    # small shapes consistent with the module's forward: x (N, nfeat), A_norm (N, N)
    N, nfeat, nhid, nlatent, nclass = 16, 32, 64, 32, 8

    key = jax.random.PRNGKey(0)
    kx, ka, kp, ke = jax.random.split(key, 4)

    x = jax.random.normal(kx, (N, nfeat), dtype=jnp.float32)

    # deterministic symmetric row-normalized adjacency
    raw = jax.random.uniform(ka, (N, N))
    adj = (raw > 0.5).astype(jnp.float32)
    adj = jnp.maximum(adj, adj.T) + jnp.eye(N, dtype=jnp.float32)
    deg = jnp.sum(adj, axis=1, keepdims=True)
    A_norm = adj / deg

    params = make_params(kp, nfeat, nhid, nlatent, nclass)

    # eps ~ N(0,1), same role as torch.randn_like(std) in reparameterize
    # TODO(synk): optionally draw eps in-kernel via pltpu.prng_seed/prng_random_bits
    # (removes the eps lanes from the input slab but breaks bitwise parity with
    # the host jax.random stream used for this check).
    eps = jax.random.normal(ke, (N, nlatent), dtype=jnp.float32)

    logits, mu, logvar = variational_gcn_forward(x, A_norm, params, eps)
    jax.block_until_ready((logits, mu, logvar))

    # reference check in plain JAX (original association, unfused weights)
    h_ref = jnp.maximum(A_norm @ (x @ params["w1"]), 0.0)
    mu_ref = A_norm @ (h_ref @ params["wmu"])
    lv_ref = A_norm @ (h_ref @ params["wlv"])
    z_ref = mu_ref + eps * jnp.exp(0.5 * lv_ref)
    logits_ref = z_ref @ params["wc_t"] + params["bc"][None, :]

    assert jnp.allclose(mu, mu_ref, atol=1e-3, rtol=1e-3)
    assert jnp.allclose(logvar, lv_ref, atol=1e-3, rtol=1e-3)
    assert jnp.allclose(logits, logits_ref, atol=1e-3, rtol=1e-3)

    print("KERNEL_OK")
</pallas_src>

<mosaic_0001>
module attributes {stable_mosaic.version = 11 : i64} {
  func.func @_vgcn_kernel(%arg0: memref<16x128xf32, #tpu.memory_space<vmem>>, %arg1: memref<16x16xf32, #tpu.memory_space<vmem>>, %arg2: memref<136x128xf32, #tpu.memory_space<vmem>>, %arg3: memref<16x128xf32, #tpu.memory_space<vmem>>) attributes {dimension_semantics = [], scalar_prefetch = 0 : i64, scratch_operands = 0 : i64, tpu.core_type = #tpu.core_type<tc>} {
    %c0 = arith.constant 0 : index
    %c0_0 = arith.constant 0 : index
    %0 = vector.load %arg1[%c0, %c0_0] : memref<16x16xf32, #tpu.memory_space<vmem>>, vector<16x16xf32>
    %c0_1 = arith.constant 0 : index
    %c0_2 = arith.constant 0 : index
    %1 = vector.load %arg0[%c0_1, %c0_2] : memref<16x128xf32, #tpu.memory_space<vmem>>, vector<16x32xf32>
    %c0_3 = arith.constant 0 : index
    %c32 = arith.constant 32 : index
    %2 = vector.load %arg0[%c0_3, %c32] : memref<16x128xf32, #tpu.memory_space<vmem>>, vector<16x32xf32>
    %c0_4 = arith.constant 0 : index
    %c0_5 = arith.constant 0 : index
    %3 = vector.load %arg2[%c0_4, %c0_5] : memref<136x128xf32, #tpu.memory_space<vmem>>, vector<32x64xf32>
    %c32_6 = arith.constant 32 : index
    %c0_7 = arith.constant 0 : index
    %4 = vector.load %arg2[%c32_6, %c0_7] : memref<136x128xf32, #tpu.memory_space<vmem>>, vector<64x64xf32>
    %c96 = arith.constant 96 : index
    %c0_8 = arith.constant 0 : index
    %5 = vector.load %arg2[%c96, %c0_8] : memref<136x128xf32, #tpu.memory_space<vmem>>, vector<32x8xf32>
    %c128 = arith.constant 128 : index
    %c0_9 = arith.constant 0 : index
    %6 = vector.load %arg2[%c128, %c0_9] : memref<136x128xf32, #tpu.memory_space<vmem>>, vector<1x8xf32>
    %cst = arith.constant dense<0.000000e+00> : vector<16x32xf32>
    %7 = tpu.matmul %0, %1, %cst {dimension_numbers = #tpu.dot_dimension_numbers<[1], [0], [0], [1], [0, 0, 1, 1], [], []>} : vector<16x16xf32>, vector<16x32xf32>, vector<16x32xf32> -> vector<16x32xf32>
    %cst_10 = arith.constant dense<0.000000e+00> : vector<16x64xf32>
    %8 = tpu.matmul %7, %3, %cst_10 {dimension_numbers = #tpu.dot_dimension_numbers<[1], [0], [0], [1], [0, 0, 1, 1], [], []>} : vector<16x32xf32>, vector<32x64xf32>, vector<16x64xf32> -> vector<16x64xf32>
    %cst_11 = arith.constant 0.000000e+00 : f32
    %9 = vector.broadcast %cst_11 : f32 to vector<16x64xf32>
    %10 = arith.maximumf %8, %9 : vector<16x64xf32>
    %cst_12 = arith.constant dense<0.000000e+00> : vector<16x64xf32>
    %11 = tpu.matmul %10, %4, %cst_12 {dimension_numbers = #tpu.dot_dimension_numbers<[1], [0], [0], [1], [0, 0, 1, 1], [], []>} : vector<16x64xf32>, vector<64x64xf32>, vector<16x64xf32> -> vector<16x64xf32>
    %cst_13 = arith.constant dense<0.000000e+00> : vector<16x64xf32>
    %12 = tpu.matmul %0, %11, %cst_13 {dimension_numbers = #tpu.dot_dimension_numbers<[1], [0], [0], [1], [0, 0, 1, 1], [], []>} : vector<16x16xf32>, vector<16x64xf32>, vector<16x64xf32> -> vector<16x64xf32>
    %13 = vector.extract_strided_slice %12 {offsets = [0, 0], sizes = [16, 32], strides = [1, 1]} : vector<16x64xf32> to vector<16x32xf32>
    %14 = vector.extract_strided_slice %12 {offsets = [0, 32], sizes = [16, 32], strides = [1, 1]} : vector<16x64xf32> to vector<16x32xf32>
    %cst_14 = arith.constant 5.000000e-01 : f32
    %15 = vector.broadcast %cst_14 : f32 to vector<16x32xf32>
    %16 = arith.mulf %15, %14 : vector<16x32xf32>
    %17 = math.exp %16 : vector<16x32xf32>
    %18 = arith.mulf %2, %17 : vector<16x32xf32>
    %19 = arith.addf %13, %18 : vector<16x32xf32>
    %cst_15 = arith.constant dense<0.000000e+00> : vector<16x8xf32>
    %20 = tpu.matmul %19, %5, %cst_15 {dimension_numbers = #tpu.dot_dimension_numbers<[1], [0], [0], [1], [0, 0, 1, 1], [], []>} : vector<16x32xf32>, vector<32x8xf32>, vector<16x8xf32> -> vector<16x8xf32>
    %21 = vector.broadcast %6 : vector<1x8xf32> to vector<16x8xf32>
    %22 = arith.addf %20, %21 : vector<16x8xf32>
    %c0_16 = arith.constant 0 : index
    %c0_17 = arith.constant 0 : index
    %23 = vector.load %arg3[%c0_16, %c0_17] : memref<16x128xf32, #tpu.memory_space<vmem>>, vector<16x64xf32>
    tpu.vector_store %arg3[%c0_16, %c0_17], %12 {strides = array<i32>} : memref<16x128xf32, #tpu.memory_space<vmem>>, vector<16x64xf32>,
    %c0_18 = arith.constant 0 : index
    %c64 = arith.constant 64 : index
    %24 = vector.load %arg3[%c0_18, %c64] : memref<16x128xf32, #tpu.memory_space<vmem>>, vector<16x8xf32>
    tpu.vector_store %arg3[%c0_18, %c64], %22 {strides = array<i32>} : memref<16x128xf32, #tpu.memory_space<vmem>>, vector<16x8xf32>,
    %cst_19 = arith.constant 0.000000e+00 : f32
    %25 = vector.broadcast %cst_19 : f32 to vector<16x56xf32>
    %c0_20 = arith.constant 0 : index
    %c72 = arith.constant 72 : index
    %26 = vector.load %arg3[%c0_20, %c72] : memref<16x128xf32, #tpu.memory_space<vmem>>, vector<16x56xf32>
    tpu.vector_store %arg3[%c0_20, %c72], %25 {strides = array<i32>} : memref<16x128xf32, #tpu.memory_space<vmem>>, vector<16x56xf32>,
    return
  }
}

</mosaic_0001>

<bundles_post_ra>
// kernel: tpu_custom_call.1
= control target key start
LH: loop header
LB: loop body
LE: loop exit
PB: predicated region body
PF: predicated region fallthrough
CT: control target
= control target key end

     0   :  { %8 = vsyncpa [#allocation3], 0  ;;  %s896_s0 = inlined_call_operand.hbm [shape: f32[16,128], index: 0, kind: input, shape index: {}]   ;;  %s897_s1 = inlined_call_operand.hbm [shape: f32[16,16], index: 1, kind: input, shape index: {}]   ;;  %s898_s2 = inlined_call_operand.hbm [shape: f32[136,128], index: 2, kind: input, shape index: {}]   ;;  %s899_s3 = inlined_call_operand.hbm [shape: f32[16,128], index: 3, kind: output, shape index: {}]  }
   0x1   :  { %9 = vsyncpa [#allocation6], 0 }
   0x2   :  { %10 = vsyncpa [#allocation4], 0  ;;  %s780_s12 = smov [#allocation5]   ;;  %s781_s14 = smov [#allocation2]  }
   0x3   :  { %s28_s13 = sshll.u32 %s780_s12, 4  ;;  %s16_s15 = sshll.u32 %s781_s14, 4  ;;  %s29_s13 = int_to_ptr.vmem [resolvable:$true] %s28_s13  ;;  %s809_s15 = int_to_ptr.vmem [resolvable:$true] %s16_s15 }
   0x4   :  { %s686_s18 = scalar_lea.hbm %s897_s1, 256 }
   0x5   :  { %p687_p0 = scmp.ne.s32.totalorder %s897_s1, %s686_s18  ;;  %p690_p1 = scmp.lt.u32.totalorder %s686_s18, %s897_s1 }
   0x7   :  { %p692_p2 = pnand %p690_p1, %p687_p0 }
   0x9   :  { %695 = shalt.err (!%p692_p2)
}
   0xa   :  { %s696_s23 = scalar_lea.vmem %s29_s13, 256  ;;  %p701_p4 = scmp.lt.s32.totalorder %s29_s13, %s29_s13 }
   0xb   :  { %p697_p3 = scmp.ne.s32.totalorder %s29_s13, %s696_s23  ;;  %p702_p5 = scmp.lt.s32.totalorder %s696_s23, %s696_s23 }
   0xd   :  { %p703_p6 = por %p702_p5, %p701_p4 }
   0xf   :  { %p704_p7 = pnand %p703_p6, %p697_p3 }
  0x11   :  { %707 = shalt.err (!%p704_p7)
}
  0x12   :  { %s782_s24 = smov 128   ;;  %s783_s25 = smov 8  }
  0x13   :  { %34 = dma.hbm_to_vmem [thread:$0]  %s897_s1, 256, %s29_s13, [#allocation6], %s782_s24, %s782_s24, %s783_s25  }
  0x14   :  { %s708_s30 = scalar_lea.hbm %s896_s0, 256 }
  0x15   :  { %p709_p8 = scmp.ne.s32.totalorder %s896_s0, %s708_s30  ;;  %p712_p9 = scmp.lt.u32.totalorder %s708_s30, %s896_s0 }
  0x17   :  { %p714_p10 = pnand %p712_p9, %p709_p8 }
  0x19   :  { %717 = shalt.err (!%p714_p10)
}
  0x1a   :  { %s718_s8 = scalar_lea.vmem %s809_s15, 256  ;;  %p723_p12 = scmp.lt.s32.totalorder %s809_s15, %s809_s15 }
  0x1b   :  { %p719_p11 = scmp.ne.s32.totalorder %s809_s15, %s718_s8  ;;  %p724_p13 = scmp.lt.s32.totalorder %s718_s8, %s718_s8 }
  0x1d   :  { %p725_p0 = por %p724_p13, %p723_p12 }
  0x1f   :  { %p726_p1 = pnand %p725_p0, %p719_p11 }
  0x21   :  { %729 = shalt.err (!%p726_p1)
}
  0x22   :  { %22 = dma.hbm_to_vmem [thread:$0]  %s896_s0, 256, %s809_s15, [#allocation3], %s782_s24, %s782_s24, %s783_s25  }
  0x23   :  { %s784_s10 = smov [#allocation7]   ;;  %s730_s14 = scalar_lea.hbm %s898_s2, 2176 }
  0x24   :  { %s40_s11 = sshll.u32 %s784_s10, 4  ;;  %p731_p2 = scmp.ne.s32.totalorder %s898_s2, %s730_s14  ;;  %s41_s11 = int_to_ptr.vmem [resolvable:$true] %s40_s11 }
  0x25   :  { %p734_p3 = scmp.lt.u32.totalorder %s730_s14, %s898_s2 }
  0x27   :  { %p736_p4 = pnand %p734_p3, %p731_p2 }
  0x29   :  { %739 = shalt.err (!%p736_p4)
}
  0x2a   :  { %s740_s20 = scalar_lea.vmem %s41_s11, 2176  ;;  %p745_p6 = scmp.lt.s32.totalorder %s41_s11, %s41_s11 }
  0x2b   :  { %p741_p5 = scmp.ne.s32.totalorder %s41_s11, %s740_s20  ;;  %p746_p7 = scmp.lt.s32.totalorder %s740_s20, %s740_s20 }
  0x2d   :  { %p747_p8 = por %p746_p7, %p745_p6 }
  0x2f   :  { %p748_p9 = pnand %p747_p8, %p741_p5 }
  0x31   :  { %751 = shalt.err (!%p748_p9)
}
  0x32   :  { %46 = dma.hbm_to_vmem [thread:$0]  %s898_s2, 2176, %s41_s11, [#allocation6], %s782_s24, %s782_s24, %s783_s25  }
  0x33   :  { %774 = dma.done.wait [#allocation3], 256  }
  0x34   :  { %775 = vsyncadd [#allocation3], 4294967040 }
  0x35   :  { %776 = dma.done.wait [#allocation6], 2432  }
  0x36   :  { %777 = vsyncadd [#allocation6], 4294964864  ;;  %vm77_vm0 = vcmask 130048   ;;  %v861_v0 = vld [vmem:[#allocation2] sm:$0xff]  ;;  %v863_v1 = vld [vmem:[#allocation2 + $0x8] sm:$0xff]  ;;  %vm159_vm1 = vcmask 261120  }
  0x37   :  { %v56_v2 = vld [vmem:[#allocation5] sm:$0xff]  ;;  %v633_v3 = vpack.c.bf16 %v863_v1, %v861_v0  ;;  %v60_v4 = vld [vmem:[#allocation7] sm:$0xff]  ;;  %v61_v5 = vld [vmem:[#allocation7 + $0x8] sm:$0xff]  ;;  %vm243_vm2 = vcmask 523264   ;;  %s785_s2 = smov 96   ;;  %s786_s21 = smov 64  }
  0x38   :  { %582 = vmatprep.mubr.msk.f32.mxu0 %vm77_vm0, %v56_v2  ;;  %v637_v6 = vpack.c.bf16 %v61_v5, %v60_v4  ;;  %v62_v7 = vld [vmem:[#allocation7 + $0x10] sm:$0xff]  ;;  %v63_v8 = vld [vmem:[#allocation7 + $0x18] sm:$0xff]  ;;  %v64_v11 = vld [vmem:[#allocation7 + $0x20] sm:$0xff]  ;;  %vm513_vm3 = vcmask 589312   ;;  %vm516_vm4 = vcmask 1048128   ;;  %s787_s22 = smov [#allocation8]  }
  0x39   :  { %634 = vmatprep.subr.bf16.mxu0 %v633_v3  ;;  %v641_v9 = vpack.c.bf16 %v63_v8, %v62_v7  ;;  %v57_v10 = vld [vmem:[#allocation5 + $0x8] sm:$0xff]  ;;  %v65_v12 = vld [vmem:[#allocation7 + $0x28] sm:$0xff]  ;;  %v66_v13 = vld [vmem:[#allocation7 + $0x30] sm:$0xff]  ;;  %s524_s23 = sshll.u32 %s787_s22, 4  ;;  %v788_v58 = vmov 0.0   ;;  %s525_s23 = int_to_ptr.vmem [resolvable:$true] %s524_s23 }
  0x3a   :  { %636 = vmatpush3.bf16.msra.mxu0 %v633_v3  ;;  %638 = vmatprep.subr.bf16.mxu1 %v637_v6  ;;  %v645_v14 = vpack.c.bf16 %v65_v12, %v64_v11  ;;  %v67_v15 = vld [vmem:[#allocation7 + $0x38] sm:$0xff]  ;;  %v68_v17 = vld [vmem:[#allocation7 + $0x40] sm:$0xff]  ;;  %v69_v18 = vld [vmem:[#allocation7 + $0x48] sm:$0xff]  ;;  %s752_s26 = scalar_lea.vmem %s525_s23, 256  ;;  %p757_p11 = scmp.lt.s32.totalorder %s525_s23, %s525_s23 }
  0x3b   :  { %640 = vmatpush3.bf16.msra.mxu1 %v637_v6  ;;  %v649_v16 = vpack.c.bf16 %v67_v15, %v66_v13  ;;  %v653_v19 = vpack.c.bf16 %v69_v18, %v68_v17  ;;  %v70_v22 = vld [vmem:[#allocation7 + $0x50] sm:$0xff]  ;;  %v71_v23 = vld [vmem:[#allocation7 + $0x58] sm:$0xff]  ;;  %v72_v32 = vld [vmem:[#allocation7 + $0x60] sm:$0xff]  ;;  %p753_p10 = scmp.ne.s32.totalorder %s525_s23, %s752_s26  ;;  %p758_p12 = scmp.lt.s32.totalorder %s752_s26, %s752_s26 }
  0x3c   :  { %642 = vmatprep.subr.bf16.mxu1 %v641_v9  ;;  %646 = vmatprep.subr.bf16.mxu0 %v645_v14  ;;  %v657_v24 = vpack.c.bf16 %v71_v23, %v70_v22  ;;  %v73_v33 = vld [vmem:[#allocation7 + $0x68] sm:$0xff]  ;;  %v74_v41 = vld [vmem:[#allocation7 + $0x70] sm:$0xff]  ;;  %v75_v42 = vld [vmem:[#allocation7 + $0x78] sm:$0xff] }
  0x3d   :  { %583 = vmatmul.mubr.msk.f32.vlgmr.msra.gmra.mrb[0].mxu0 %vm77_vm0, %v57_v10  ;;  %v665_v34 = vpack.c.bf16 %v73_v33, %v72_v32  ;;  %v669_v43 = vpack.c.bf16 %v75_v42, %v74_v41  ;;  %v545_v52 = vld [vmem:[#allocation7 + $0x80] ss:$0 sm:$0xff]  ;;  %p759_p13 = por %p758_p12, %p757_p11 }
  0x3e   :  { %648 = vmatpush3.bf16.msra.mxu0 %v645_v14 }
  0x3f   :  { %644 = vmatpush3.bf16.msra.mxu1 %v641_v9  ;;  %650 = vmatprep.subr.bf16.mxu0 %v649_v16  ;;  %p760_p0 = pnand %p759_p13, %p753_p10 }
  0x42   :  { %652 = vmatpush3.bf16.msra.mxu0 %v649_v16 }
  0x43   :  { %654 = vmatprep.subr.bf16.mxu0 %v653_v19 }
  0x46   :  { %656 = vmatpush3.bf16.msra.mxu0 %v653_v19 }
  0x47   :  { %658 = vmatprep.subr.bf16.mxu0 %v657_v24 }
  0x4a   :  { %660 = vmatpush3.bf16.msra.mxu0 %v657_v24 }
 0x110   :  { %v584_v20 = vpop.f32.mrb[0].mxu0 }
 0x111   :  { %v150_v21 = vpop.f32.mrb[1].mxu0 }
 0x112   :  { %593 = vmatprep.mubr.msk.f32.mxu1 %vm159_vm1, %v150_v21 }
 0x113   :  { %594 = vmatmul.mubr.msk.f32.vlgmr.msra.gmra.mrb[0].mxu1 %vm159_vm1, %v584_v20 }
 0x114   :  { %619 = vmatprep.mubr.msk.f32.mxu1 %vm77_vm0, %v56_v2 }
 0x1e6   :  { %v595_v25 = vpop.f32.mrb[0].mxu1 }
 0x1e7   :  { %v232_v26 = vpop.f32.mrb[1].mxu1  ;;  %v242_v28 = vmax.f32 %v595_v25, 0.0 }
 0x1e8   :  { %v241_v27 = vmax.f32 %v232_v26, 0.0 }
 0x1ea   :  { %612 = vmatprep.mubr.msk.f32.mxu0 %vm243_vm2, %v241_v27 }
 0x1eb   :  { %613 = vmatmul.mubr.msk.f32.vlgmr.msra.gmra.mrb[2].mxu0 %vm243_vm2, %v242_v28 }
 0x2be   :  { %v614_v29 = vpop.f32.mrb[2].mxu0 }
 0x2bf   :  { %v316_v30 = vpop.f32.mrb[3].mxu0 }
 0x2c0   :  { %v661_v31 = vpack.c.bf16 %v614_v29, %v316_v30 }
 0x2c2   :  { %662 = vmatprep.subr.bf16.mxu1 %v661_v31 }
 0x2c3   :  { %664 = vmatpush3.bf16.msra.mxu1 %v661_v31 }
 0x2c4   :  { %666 = vmatprep.subr.bf16.mxu1 %v665_v34 }
 0x2c6   :  { %620 = vmatmul.mubr.msk.f32.vlgmr.msra.gmra.mrb[2].mxu1 %vm77_vm0, %v57_v10 }
 0x2c7   :  { %668 = vmatpush3.bf16.msra.mxu1 %v665_v34 }
 0x2c8   :  { %670 = vmatprep.subr.bf16.mxu1 %v669_v43 }
 0x2cb   :  { %672 = vmatpush3.bf16.msra.mxu1 %v669_v43 }
 0x399   :  { %v621_v35 = vpop.f32.mrb[2].mxu1 }
 0x39a   :  { %v401_v36 = vmul.f32 0.5, %v621_v35  ;;  %504 = vst.msk [vmem:[#allocation8 + $0x8] sm:$0xff] %vm243_vm2, %v621_v35  ;;  %v391_v37 = vpop.f32.mrb[3].mxu1 }
 0x39b   :  { %v400_v38 = vmul.f32 0.5, %v391_v37  ;;  %503 = vst.msk [vmem:[#allocation8] sm:$0xff] %vm243_vm2, %v391_v37 }
 0x39c   :  { %v404_v39 = vmul.f32 1.442695, %v401_v36 }
 0x39d   :  { %v402_v40 = vmul.f32 1.442695, %v400_v38 }
 0x39f   :  { %682 = vpow2.f32 %v402_v40 }
 0x3a0   :  { %684 = vpow2.f32 %v404_v39 }
 0x3a9   :  { %v683_v44 = vpop.eup %682 }
 0x3aa   :  { %v406_v45 = vmul.f32 %v683_v44, %v861_v0  ;;  %v685_v46 = vpop.eup %684 }
 0x3ab   :  { %v407_v47 = vmul.f32 %v685_v46, %v863_v1 }
 0x3ac   :  { %410 = vrot.lane.b32.xlu0 %v406_v45, %s785_s2 }
 0x3b0   :  { %412 = vrot.lane.b32.xlu0 %v407_v47, %s785_s2 }
 0x41e   :  { %v411_v48 = vpop.permute.xlu0 %410 }
 0x41f   :  { %v416_v49 = vadd.f32 %v411_v48, %v391_v37 }
 0x421   :  { %630 = vmatprep.mubr.msk.f32.mxu1 %vm159_vm1, %v416_v49 }
 0x422   :  { %v413_v50 = vpop.permute.xlu0 %412 }
 0x423   :  { %v417_v51 = vadd.f32 %v621_v35, %v413_v50 }
 0x425   :  { %631 = vmatmul.mubr.msk.f32.vlgmr.msra.gmra.mrb[4].mxu1 %vm159_vm1, %v417_v51 }
 0x4f8   :  { %v632_v53 = vpop.f32.mrb[4].mxu1 }
 0x4f9   :  { %v494_v54 = vpop.f32.mrb[5].mxu1  ;;  %v500_v56 = vadd.f32 %v632_v53, %v545_v52 }
 0x4fa   :  { %v495_v55 = vadd.f32 %v545_v52, %v494_v54 }
 0x4fc   :  { %507 = vrot.lane.b32.xlu1 %v495_v55, %s786_s21 }
 0x500   :  { %509 = vrot.lane.b32.xlu1 %v500_v56, %s786_s21 }
 0x56e   :  { %v508_v57 = vpop.permute.xlu1 %507 }
 0x56f   :  { %514 = vst.msk [vmem:[#allocation8] sm:$0xff] %vm513_vm3, %v508_v57 }
 0x570   :  { %517 = vst.msk [vmem:[#allocation8] sm:$0xff] %vm516_vm4, %v788_v58 }
 0x572   :  { %v510_v59 = vpop.permute.xlu1 %509 }
 0x573   :  { %515 = vst.msk [vmem:[#allocation8 + $0x8] sm:$0xff] %vm513_vm3, %v510_v59 }
 0x574   :  { %518 = vst.msk [vmem:[#allocation8 + $0x8] sm:$0xff] %vm516_vm4, %v788_v58 }
 0x575   :  { %763 = shalt.err (!%p760_p0)
}
 0x576   :  { %s764_s29 = scalar_lea.hbm %s899_s3, 256 }
 0x577   :  { %p765_p1 = scmp.ne.s32.totalorder %s899_s3, %s764_s29  ;;  %p768_p2 = scmp.lt.u32.totalorder %s764_s29, %s899_s3 }
 0x579   :  { %p770_p3 = pnand %p768_p2, %p765_p1 }
 0x57b   :  { %773 = shalt.err (!%p770_p3)
}
 0x57c   :  { %530 = dma.vmem_to_hbm [thread:$0]  %s525_s23, 256, %s899_s3, [#allocation4], %s782_s24, %s782_s24, %s783_s25  }
 0x57d   :  { %778 = dma.done.wait [#allocation4], 256  }
 0x57e   :  { %779 = vsyncadd [#allocation4], 4294967040 }
 0x57f   :  { %534 = vsyncpa [#allocation3], 1 }
 0x580   :  { %535 = vsyncpa [#allocation6], 1 }
 0x581   :  { %536 = vsyncpa [#allocation4], 1 }

</bundles_post_ra>
